<compile_context>
chip_gen: v7x
topology: tpu7x:2x2x1
jax: 0.10.0
libtpu: 0.0.40
codegen_flags: <defaults>
</compile_context>

<pallas_src>
import functools
from math import sqrt

import jax
import jax.numpy as jnp
from jax.experimental import pallas as pl
from jax.experimental.pallas import tpu as pltpu

NEG_SLOPE = 0.2
ACT_GAIN = sqrt(2.0)


def _round_up(x, m):
    return ((x + m - 1) // m) * m


# ----------------------------------------------------------------------------
# Pallas kernels
# ----------------------------------------------------------------------------
def _conv_mm_kernel(x_ref, w_ref, b_ref, o_ref, acc_ref, *, scale, activation):
    """K-tiled matmul with f32 accumulator; scale/bias/ScaledLeakyReLU epilogue."""
    k = pl.program_id(2)

    @pl.when(k == 0)
    def _():
        acc_ref[...] = jnp.zeros_like(acc_ref)

    acc_ref[...] += jnp.dot(x_ref[...], w_ref[...],
                            preferred_element_type=jnp.float32)

    @pl.when(k == pl.num_programs(2) - 1)
    def _():
        y = acc_ref[...] * jnp.float32(scale) + b_ref[...]
        if activation:
            y = jnp.where(y >= 0, y, jnp.float32(NEG_SLOPE) * y) * jnp.float32(ACT_GAIN)
        o_ref[...] = y.astype(o_ref.dtype)


def _blur_kernel(xp_ref, o_ref):
    """Separable depthwise [1,2,1]/4 (H) then [1,2,1]/4 (W) on a pre-padded block."""
    bc, hp, wp = xp_ref.shape
    hh, ww = hp - 2, wp - 2
    xp = xp_ref[...].astype(jnp.float32)                          # (bc, H+2, W+2)
    # vertical pass (keep padded width as zero-pad for the horizontal pass)
    yv = (xp[:, 0:hh, :] + 2.0 * xp[:, 1:hh + 1, :] + xp[:, 2:hh + 2, :]) * 0.25
    # horizontal pass
    out = (yv[:, :, 0:ww] + 2.0 * yv[:, :, 1:ww + 1] + yv[:, :, 2:ww + 2]) * 0.25
    o_ref[...] = out.astype(o_ref.dtype)


# ----------------------------------------------------------------------------
# Pallas call wrappers
# ----------------------------------------------------------------------------
def _pallas_conv_matmul(cols, wmat, bias, scale, activation, out_dtype):
    """(M,K) @ (K,N) with fused scale + bias + ScaledLeakyReLU, lane-dense padding."""
    M, K = cols.shape
    _, Nout = wmat.shape

    # ---- tile / padding selection -------------------------------------------------
    # N (lanes): pad Cout to a 128 multiple; use 256-wide tiles when divisible.
    Np = _round_up(Nout, 128)
    tn = 256 if Np % 256 == 0 else 128
    # K: pad to a 128 multiple; pick the largest 128-multiple tile (<=512) dividing it.
    Kp = _round_up(K, 128)
    tk = 128
    for cand in (512, 384, 256, 128):
        if Kp % cand == 0:
            tk = cand
            break
    # M (sublanes): single tile when small, else 512-row tiles.
    M8 = _round_up(M, 8)
    tm = M8 if M8 <= 1024 else 512
    Mp = _round_up(M8, tm)

    # ---- pad + bf16 cast (MXU inputs), f32 bias ------------------------------------
    cols_p = jnp.pad(cols, ((0, Mp - M), (0, Kp - K))) if (Mp != M or Kp != K) else cols
    wmat_p = jnp.pad(wmat, ((0, Kp - K), (0, Np - Nout))) if (Kp != K or Np != Nout) else wmat
    bias_p = jnp.pad(bias, (0, Np - Nout)) if Np != Nout else bias
    cols_p = cols_p.astype(jnp.bfloat16)
    wmat_p = wmat_p.astype(jnp.bfloat16)
    bias_p = bias_p.reshape(1, Np).astype(jnp.float32)

    grid = (Mp // tm, Np // tn, Kp // tk)
    kernel = functools.partial(_conv_mm_kernel, scale=scale, activation=activation)

    out = pl.pallas_call(
        kernel,
        out_shape=jax.ShapeDtypeStruct((Mp, Np), out_dtype),
        grid_spec=pltpu.PrefetchScalarGridSpec(
            num_scalar_prefetch=0,
            grid=grid,
            in_specs=[
                pl.BlockSpec((tm, tk), lambda i, j, k: (i, k)),
                pl.BlockSpec((tk, tn), lambda i, j, k: (k, j)),
                pl.BlockSpec((1, tn), lambda i, j, k: (0, j)),
            ],
            out_specs=pl.BlockSpec((tm, tn), lambda i, j, k: (i, j)),
            scratch_shapes=[pltpu.VMEM((tm, tn), jnp.float32)],
        ),
        compiler_params=pltpu.CompilerParams(
            dimension_semantics=("parallel", "parallel", "arbitrary"),
            vmem_limit_bytes=32 * 1024 * 1024,
        ),
        cost_estimate=pl.CostEstimate(
            flops=2 * Mp * Np * Kp,
            transcendentals=0,
            bytes_accessed=Mp * Kp * 2 + Kp * Np * 2 + Mp * Np * 4 + Np * 4,
        ),
    )(cols_p, wmat_p, bias_p)

    if Mp != M or Np != Nout:
        out = out[:M, :Nout]
    return out


def blur2d(x):
    """Blur2d(kernel_size=3, padding=1): depthwise [1,2,1]x[1,2,1]/16, zero padding."""
    n, c, h, w = x.shape
    xp = jnp.pad(x, ((0, 0), (0, 0), (1, 1), (1, 1)))             # spatial zero-pad (glue)
    xp = xp.reshape(n * c, h + 2, w + 2)
    nc = n * c

    # Block over the (n*c) axis; pick a divisor of nc with a modest VMEM footprint.
    cap = max(1, (2 * 1024 * 1024) // (4 * (h + 2) * (w + 2)))
    cap = min(cap, 256, nc)
    bc = 1
    for cand in range(cap, 0, -1):
        if nc % cand == 0:
            bc = cand
            break

    out = pl.pallas_call(
        _blur_kernel,
        out_shape=jax.ShapeDtypeStruct((nc, h, w), x.dtype),
        grid=(nc // bc,),
        in_specs=[pl.BlockSpec((bc, h + 2, w + 2), lambda i: (i, 0, 0))],
        out_specs=pl.BlockSpec((bc, h, w), lambda i: (i, 0, 0)),
        compiler_params=pltpu.CompilerParams(
            dimension_semantics=("parallel",)),
    )(xp)
    return out.reshape(n, c, h, w)


# ----------------------------------------------------------------------------
# Conv plumbing (plain-JAX glue: NHWC im2col, reshapes)
# ----------------------------------------------------------------------------
def _im2col_nhwc(x_nchw, kh, kw, stride, padding, dilation):
    n, c, h, w = x_nchw.shape
    x = jnp.transpose(x_nchw, (0, 2, 3, 1))                       # single NCHW->NHWC transpose
    xp = jnp.pad(x, ((0, 0), (padding, padding), (padding, padding), (0, 0)))
    oh = (h + 2 * padding - dilation * (kh - 1) - 1) // stride + 1
    ow = (w + 2 * padding - dilation * (kw - 1) - 1) // stride + 1
    patches = []
    for i in range(kh):
        for j in range(kw):
            hs, ws = i * dilation, j * dilation
            sl = xp[:, hs:hs + stride * (oh - 1) + 1:stride,
                       ws:ws + stride * (ow - 1) + 1:stride, :]   # (n, oh, ow, c)
            patches.append(sl)
    cols = jnp.stack(patches, axis=3)                             # (n, oh, ow, kh*kw, c)
    cols = cols.reshape(n * oh * ow, kh * kw * c)                 # contiguous, no transpose
    return cols, oh, ow


def scaled_conv2d(x, weight, bias, *, stride, padding, dilation, scale, activation):
    """ScaledConv2d (+ optional fused ScaledLeakyReLU). x NCHW, weight OIHW."""
    cout, cin, kh, kw = weight.shape
    n = x.shape[0]
    cols, oh, ow = _im2col_nhwc(x, kh, kw, stride, padding, dilation)
    # column ordering is (kh, kw, cin) -> reorder the (small) weight host-side.
    wmat = jnp.transpose(weight, (2, 3, 1, 0)).reshape(kh * kw * cin, cout)
    b = bias if bias is not None else jnp.zeros((cout,), jnp.float32)
    y = _pallas_conv_matmul(cols, wmat, b, scale, activation, out_dtype=x.dtype)
    y = y.reshape(n, oh, ow, cout)
    return jnp.transpose(y, (0, 3, 1, 2))                         # back to NCHW (module layout)


# ----------------------------------------------------------------------------
# ScaledConvolutionLayer forward
# ----------------------------------------------------------------------------
def scaled_convolution_layer(x, weight, bias, *, stride=1, padding=0, dilation=1,
                             blur=True, activation=True):
    cout, cin, kh, kw = weight.shape
    if blur and stride != 1:
        x = blur2d(x)
    scale = 1.0 / sqrt(cin * kh * kw)                             # equalized-LR fan_in scale
    return scaled_conv2d(x, weight, bias, stride=stride, padding=padding,
                         dilation=dilation, scale=scale, activation=activation)


# ----------------------------------------------------------------------------
# Pure-JAX fp32 reference (lax.conv) for correctness checking
# ----------------------------------------------------------------------------
def _ref_blur(x):
    c = x.shape[1]
    k1 = jnp.array([1.0, 2.0, 1.0], jnp.float32)
    k2 = jnp.outer(k1, k1)
    k2 = k2 / k2.sum()
    w = jnp.tile(k2.reshape(1, 1, 3, 3), (c, 1, 1, 1))
    return jax.lax.conv_general_dilated(
        x, w, (1, 1), [(1, 1), (1, 1)],
        dimension_numbers=("NCHW", "OIHW", "NCHW"), feature_group_count=c)


def _ref_forward(x, weight, bias, *, stride, padding, dilation, blur, activation):
    cout, cin, kh, kw = weight.shape
    if blur and stride != 1:
        x = _ref_blur(x)
    scale = 1.0 / sqrt(cin * kh * kw)
    y = jax.lax.conv_general_dilated(
        x, weight * scale, (stride, stride),
        [(padding, padding), (padding, padding)],
        rhs_dilation=(dilation, dilation),
        dimension_numbers=("NCHW", "OIHW", "NCHW"))
    if bias is not None:
        y = y + bias.reshape(1, -1, 1, 1)
    if activation:
        y = jnp.where(y >= 0, y, NEG_SLOPE * y) * ACT_GAIN
    return y


# ----------------------------------------------------------------------------
if __name__ == "__main__":
    key = jax.random.PRNGKey(0)
    kx, kw_, kb = jax.random.split(key, 3)

    N, C_IN, C_OUT, H, W = 2, 4, 8, 16, 16
    KSIZE, PAD, DIL = 3, 1, 1

    x = jax.random.normal(kx, (N, C_IN, H, W), jnp.float32)
    weight = jax.random.normal(kw_, (C_OUT, C_IN, KSIZE, KSIZE), jnp.float32)
    bias = 0.1 * jax.random.normal(kb, (C_OUT,), jnp.float32)

    # bf16 MXU inputs (f32 accumulation) vs fp32 lax.conv reference.
    ATOL = RTOL = 3e-2

    # Case 1: stride=2 -> Blur2d path is active.
    out1 = scaled_convolution_layer(x, weight, bias, stride=2, padding=PAD,
                                    dilation=DIL, blur=True, activation=True)
    out1 = jax.block_until_ready(out1)
    ref1 = _ref_forward(x, weight, bias, stride=2, padding=PAD,
                        dilation=DIL, blur=True, activation=True)
    ref1 = jax.block_until_ready(ref1)
    assert out1.shape == ref1.shape, (out1.shape, ref1.shape)
    assert jnp.allclose(out1, ref1, atol=ATOL, rtol=RTOL), \
        float(jnp.max(jnp.abs(out1 - ref1)))

    # Case 2: stride=1 -> no blur, plain ScaledConv2d + ScaledLeakyReLU.
    out2 = scaled_convolution_layer(x, weight, bias, stride=1, padding=PAD,
                                    dilation=DIL, blur=True, activation=True)
    out2 = jax.block_until_ready(out2)
    ref2 = _ref_forward(x, weight, bias, stride=1, padding=PAD,
                        dilation=DIL, blur=True, activation=True)
    ref2 = jax.block_until_ready(ref2)
    assert out2.shape == ref2.shape, (out2.shape, ref2.shape)
    assert jnp.allclose(out2, ref2, atol=ATOL, rtol=RTOL), \
        float(jnp.max(jnp.abs(out2 - ref2)))

    print("KERNEL_OK")
</pallas_src>

<mosaic_0001>
module attributes {stable_mosaic.version = 11 : i64} {
  func.func @_blur_kernel(%arg0: i32, %arg1: memref<8x18x18xf32, #tpu.memory_space<vmem>>, %arg2: memref<8x16x16xf32, #tpu.memory_space<vmem>>) attributes {dimension_semantics = [#tpu.dimension_semantics<parallel>], iteration_bounds = array<i64: 1>, scalar_prefetch = 0 : i64, scratch_operands = 0 : i64, tpu.core_type = #tpu.core_type<tc>, window_params = [{transform_indices = @transform_0, window_bounds = array<i64: 8, 18, 18>}, {transform_indices = @transform_1, window_bounds = array<i64: 8, 16, 16>}]} {
    %c0 = arith.constant 0 : index
    %c0_0 = arith.constant 0 : index
    %c0_1 = arith.constant 0 : index
    %0 = vector.load %arg1[%c0, %c0_0, %c0_1] : memref<8x18x18xf32, #tpu.memory_space<vmem>>, vector<8x18x18xf32>
    %1 = vector.extract_strided_slice %0 {offsets = [0, 0, 0], sizes = [8, 16, 18], strides = [1, 1, 1]} : vector<8x18x18xf32> to vector<8x16x18xf32>
    %2 = vector.extract_strided_slice %0 {offsets = [0, 1, 0], sizes = [8, 16, 18], strides = [1, 1, 1]} : vector<8x18x18xf32> to vector<8x16x18xf32>
    %cst = arith.constant 2.000000e+00 : f32
    %3 = vector.broadcast %cst : f32 to vector<8x16x18xf32>
    %4 = arith.mulf %3, %2 : vector<8x16x18xf32>
    %5 = arith.addf %1, %4 : vector<8x16x18xf32>
    %6 = vector.extract_strided_slice %0 {offsets = [0, 2, 0], sizes = [8, 16, 18], strides = [1, 1, 1]} : vector<8x18x18xf32> to vector<8x16x18xf32>
    %7 = arith.addf %5, %6 : vector<8x16x18xf32>
    %cst_2 = arith.constant 2.500000e-01 : f32
    %8 = vector.broadcast %cst_2 : f32 to vector<8x16x18xf32>
    %9 = arith.mulf %7, %8 : vector<8x16x18xf32>
    %10 = vector.extract_strided_slice %9 {offsets = [0, 0, 0], sizes = [8, 16, 16], strides = [1, 1, 1]} : vector<8x16x18xf32> to vector<8x16x16xf32>
    %11 = vector.extract_strided_slice %9 {offsets = [0, 0, 1], sizes = [8, 16, 16], strides = [1, 1, 1]} : vector<8x16x18xf32> to vector<8x16x16xf32>
    %cst_3 = arith.constant 2.000000e+00 : f32
    %12 = vector.broadcast %cst_3 : f32 to vector<8x16x16xf32>
    %13 = arith.mulf %12, %11 : vector<8x16x16xf32>
    %14 = arith.addf %10, %13 : vector<8x16x16xf32>
    %15 = vector.extract_strided_slice %9 {offsets = [0, 0, 2], sizes = [8, 16, 16], strides = [1, 1, 1]} : vector<8x16x18xf32> to vector<8x16x16xf32>
    %16 = arith.addf %14, %15 : vector<8x16x16xf32>
    %cst_4 = arith.constant 2.500000e-01 : f32
    %17 = vector.broadcast %cst_4 : f32 to vector<8x16x16xf32>
    %18 = arith.mulf %16, %17 : vector<8x16x16xf32>
    %c0_5 = arith.constant 0 : index
    %c0_6 = arith.constant 0 : index
    %c0_7 = arith.constant 0 : index
    %19 = vector.load %arg2[%c0_5, %c0_6, %c0_7] : memref<8x16x16xf32, #tpu.memory_space<vmem>>, vector<8x16x16xf32>
    tpu.vector_store %arg2[%c0_5, %c0_6, %c0_7], %18 {strides = array<i32>} : memref<8x16x16xf32, #tpu.memory_space<vmem>>, vector<8x16x16xf32>,
    return
  }
  func.func @transform_0(%arg0: i32) -> (i32, i32, i32) {
    %c0_i32 = arith.constant 0 : i32
    %c0_i32_0 = arith.constant 0 : i32
    %c0_i32_1 = arith.constant 0 : i32
    return %arg0, %c0_i32, %c0_i32_0 : i32, i32, i32
  }
  func.func @transform_1(%arg0: i32) -> (i32, i32, i32) {
    %c0_i32 = arith.constant 0 : i32
    %c0_i32_0 = arith.constant 0 : i32
    %c0_i32_1 = arith.constant 0 : i32
    return %arg0, %c0_i32, %c0_i32_0 : i32, i32, i32
  }
}

</mosaic_0001>

<bundles_post_ra>
// kernel: tpu_custom_call.1
= control target key start
LH: loop header
LB: loop body
LE: loop exit
PB: predicated region body
PF: predicated region fallthrough
CT: control target
= control target key end

     0   :  { %vm81_vm0 = vcmask 1046528   ;;  %vm178_vm1 = vcmask 1045504   ;;  %s773_s0 = inlined_call_operand.vmem [shape: f32[8,18,18], index: 0, kind: input, shape index: {}]   ;;  %s774_s1 = inlined_call_operand.hbm [shape: f32[8,16,16], index: 1, kind: output, shape index: {}]  }
   0x1   :  { %v12_v0 = vld [vmem:[%s773_s0 + $0x18] sm:$0xff]  ;;  %v13_v1 = vld [vmem:[%s773_s0 + $0x20] sm:$0xff]  ;;  %v10_v7 = vld [vmem:[%s773_s0 + $0x8] sm:$0xff] }
   0x2   :  { %v9_v2 = vld [vmem:[%s773_s0] sm:$0xff]  ;;  %v36_v3 = vmul.f32 2.0, %v12_v0  ;;  %v37_v4 = vmul.f32 2.0, %v13_v1  ;;  %v184_v5 = vrot.slane %v12_v0, 2  ;;  %v185_v6 = vrot.slane %v13_v1, 2  ;;  %v16_v18 = vld [vmem:[%s773_s0 + $0x38] sm:$0xff] }
   0x3   :  { %v33_v8 = vmul.f32 2.0, %v9_v2  ;;  %v34_v9 = vmul.f32 2.0, %v10_v7  ;;  %v179_v10 = vrot.slane %v9_v2, 2  ;;  %v180_v11 = vrot.slane %v10_v7, 2  ;;  %v14_v12 = vld [vmem:[%s773_s0 + $0x28] sm:$0x3] }
   0x4   :  { %v87_v13 = vrot.slane %v36_v3, 1  ;;  %v88_v14 = vrot.slane %v37_v4, 1  ;;  %v186_v15 = vsel %vm178_vm1, %v184_v5, %v185_v6  ;;  %v38_v16 = vmul.f32 2.0, %v14_v12  ;;  %v11_v17 = vld [vmem:[%s773_s0 + $0x10] sm:$0x3] }
   0x5   :  { %v82_v19 = vrot.slane %v33_v8, 1  ;;  %v83_v20 = vrot.slane %v34_v9, 1  ;;  %v181_v21 = vsel %vm178_vm1, %v179_v10, %v180_v11  ;;  %v187_v22 = vrot.slane %v14_v12, 2  ;;  %v17_v27 = vld [vmem:[%s773_s0 + $0x40] sm:$0x3]  ;;  %v15_v40 = vld [vmem:[%s773_s0 + $0x30] sm:$0xff] }
   0x6   :  { %v89_v23 = vsel %vm81_vm0, %v87_v13, %v88_v14  ;;  %v90_v24 = vrot.slane %v38_v16, 1  ;;  %v35_v25 = vmul.f32 2.0, %v11_v17  ;;  %v182_v26 = vrot.slane %v11_v17, 2 }
   0x7   :  { %v140_v28 = vadd.f32 %v89_v23, %v12_v0  ;;  %v84_v29 = vsel %vm81_vm0, %v82_v19, %v83_v20  ;;  %v188_v30 = vsel %vm178_vm1, %v185_v6, %v187_v22  ;;  %v40_v31 = vmul.f32 2.0, %v16_v18 }
   0x8   :  { %v138_v32 = vadd.f32 %v84_v29, %v9_v2  ;;  %v91_v33 = vsel %vm81_vm0, %v88_v14, %v90_v24  ;;  %v85_v34 = vrot.slane %v35_v25, 1  ;;  %v183_v35 = vsel %vm178_vm1, %v180_v11, %v182_v26 }
   0x9   :  { %v237_v36 = vadd.f32 %v186_v15, %v140_v28  ;;  %v141_v37 = vadd.f32 %v91_v33, %v13_v1  ;;  %v41_v38 = vmul.f32 2.0, %v17_v27  ;;  %v93_v39 = vrot.slane %v40_v31, 1 }
   0xa   :  { %v235_v41 = vadd.f32 %v181_v21, %v138_v32  ;;  %v86_v42 = vsel %vm81_vm0, %v83_v20, %v85_v34  ;;  %v190_v43 = vrot.slane %v16_v18, 2  ;;  %v192_v44 = vrot.slane %v17_v27, 2 }
   0xb   :  { %v571_v45 = vmul.f32 0.25, %v237_v36  ;;  %v238_v46 = vadd.f32 %v188_v30, %v141_v37  ;;  %v139_v47 = vadd.f32 %v86_v42, %v10_v7  ;;  %v95_v48 = vrot.slane %v41_v38, 1 }
   0xc   :  { %6 = vsyncpa [#allocation3], 0  ;;  %v573_v49 = vmul.f32 0.25, %v235_v41  ;;  %v193_v50 = vsel %vm178_vm1, %v190_v43, %v192_v44  ;;  %v39_v51 = vmul.f32 2.0, %v15_v40  ;;  %v189_v52 = vrot.slane %v15_v40, 2  ;;  %v19_v53 = vld [vmem:[%s773_s0 + $0x50] sm:$0xff] }
   0xd   :  { %v20_v54 = vld [vmem:[%s773_s0 + $0x58] sm:$0x3]  ;;  %v269_v55 = vmul.f32 2.0, %v571_v45  ;;  %v583_v56 = vmul.f32 0.25, %v238_v46  ;;  %v236_v57 = vadd.f32 %v183_v35, %v139_v47  ;;  %v96_v58 = vsel %vm81_vm0, %v93_v39, %v95_v48  ;;  %s521_s28 = smov 127   ;;  %v18_v3 = vld [vmem:[%s773_s0 + $0x48] sm:$0xff] }
   0xe   :  { %v267_v59 = vmul.f32 2.0, %v573_v49  ;;  %v143_v60 = vadd.f32 %v96_v58, %v16_v18  ;;  %v92_v61 = vrot.slane %v39_v51, 1  ;;  %v191_v62 = vsel %vm178_vm1, %v189_v52, %v190_v43  ;;  %v22_v8 = vld [vmem:[%s773_s0 + $0x68] sm:$0xff]  ;;  %v23_v9 = vld [vmem:[%s773_s0 + $0x70] sm:$0x3]  ;;  %v21_v22 = vld [vmem:[%s773_s0 + $0x60] sm:$0xff] }
   0xf   :  { %303 = vrot.lane.b32.xlu1 %v269_v55, %s521_s28  ;;  %v270_v63 = vmul.f32 2.0, %v583_v56  ;;  %v590_v0 = vmul.f32 0.25, %v236_v57  ;;  %v43_v1 = vmul.f32 2.0, %v19_v53  ;;  %v44_v2 = vmul.f32 2.0, %v20_v54  ;;  %v25_v35 = vld [vmem:[%s773_s0 + $0x80] sm:$0xff]  ;;  %v24_v51 = vld [vmem:[%s773_s0 + $0x78] sm:$0xff] }
  0x10   :  { %299 = vrot.lane.b32.xlu0 %v267_v59, %s521_s28  ;;  %v240_v4 = vadd.f32 %v193_v50, %v143_v60  ;;  %v94_v5 = vsel %vm81_vm0, %v92_v61, %v93_v39  ;;  %v195_v6 = vrot.slane %v19_v53, 2  ;;  %v197_v7 = vrot.slane %v20_v54, 2  ;;  %v26_v36 = vld [vmem:[%s773_s0 + $0x88] sm:$0x3]  ;;  %v28_v57 = vld [vmem:[%s773_s0 + $0x98] sm:$0xff]  ;;  %s523_s26 = smov [#allocation2]  }
  0x11   :  { %v268_v10 = vmul.f32 2.0, %v590_v0  ;;  %v142_v11 = vadd.f32 %v94_v5, %v15_v40  ;;  %v98_v12 = vrot.slane %v43_v1, 1  ;;  %v100_v13 = vrot.slane %v44_v2, 1  ;;  %s481_s27 = sshll.u32 %s523_s26, 4  ;;  %s482_s27 = int_to_ptr.vmem [resolvable:$true] %s481_s27 }
  0x12   :  { %v604_v14 = vmul.f32 0.25, %v240_v4  ;;  %v198_v15 = vsel %vm178_vm1, %v195_v6, %v197_v7  ;;  %v42_v16 = vmul.f32 2.0, %v18_v3  ;;  %v194_v17 = vrot.slane %v18_v3, 2  ;;  %p502_p1 = scmp.lt.s32.totalorder %s482_s27, %s482_s27 }
  0x13   :  { %305 = vrot.lane.b32.xlu1 %v270_v63, %s521_s28  ;;  %v239_v18 = vadd.f32 %v191_v62, %v142_v11  ;;  %v101_v19 = vsel %vm81_vm0, %v98_v12, %v100_v13  ;;  %v46_v20 = vmul.f32 2.0, %v22_v8  ;;  %v47_v21 = vmul.f32 2.0, %v23_v9 }
  0x14   :  { %301 = vrot.lane.b32.xlu0 %v268_v10, %s521_s28  ;;  %v272_v23 = vmul.f32 2.0, %v604_v14  ;;  %v145_v24 = vadd.f32 %v101_v19, %v19_v53  ;;  %v97_v25 = vrot.slane %v42_v16, 1  ;;  %v196_v26 = vsel %vm178_vm1, %v194_v17, %v195_v6 }
  0x15   :  { %v615_v27 = vmul.f32 0.25, %v239_v18  ;;  %v103_v28 = vrot.slane %v46_v20, 1  ;;  %v105_v29 = vrot.slane %v47_v21, 1  ;;  %v200_v30 = vrot.slane %v22_v8, 2  ;;  %v31_v18 = vld [vmem:[%s773_s0 + $0xb0] sm:$0xff] }
  0x16   :  { %v242_v31 = vadd.f32 %v198_v15, %v145_v24  ;;  %v99_v32 = vsel %vm81_vm0, %v97_v25, %v98_v12  ;;  %v202_v33 = vrot.slane %v23_v9, 2  ;;  %v45_v34 = vmul.f32 2.0, %v21_v22  ;;  %v27_v12 = vld [vmem:[%s773_s0 + $0x90] sm:$0xff] }
  0x17   :  { %309 = vrot.lane.b32.xlu1 %v272_v23, %s521_s28  ;;  %v271_v37 = vmul.f32 2.0, %v615_v27  ;;  %v144_v38 = vadd.f32 %v99_v32, %v18_v3  ;;  %v106_v39 = vsel %vm81_vm0, %v103_v28, %v105_v29  ;;  %v199_v40 = vrot.slane %v21_v22, 2  ;;  %v29_v3 = vld [vmem:[%s773_s0 + $0xa0] sm:$0x3]  ;;  %v32_v23 = vld [vmem:[%s773_s0 + $0xb8] sm:$0x3] }
  0x18   :  { %v627_v41 = vmul.f32 0.25, %v242_v31  ;;  %v147_v42 = vadd.f32 %v106_v39, %v22_v8  ;;  %v203_v43 = vsel %vm178_vm1, %v200_v30, %v202_v33  ;;  %v102_v44 = vrot.slane %v45_v34, 1 }
  0x19   :  { %307 = vrot.lane.b32.xlu0 %v271_v37, %s521_s28  ;;  %v241_v46 = vadd.f32 %v196_v26, %v144_v38  ;;  %v201_v47 = vsel %vm178_vm1, %v199_v40, %v200_v30  ;;  %v49_v48 = vmul.f32 2.0, %v25_v35  ;;  %v50_v50 = vmul.f32 2.0, %v26_v36  ;;  %v30_v37 = vld [vmem:[%s773_s0 + $0xa8] sm:$0xff]  ;;  %s522_s0 = smov 126  }
  0x1a   :  { %v274_v52 = vmul.f32 2.0, %v627_v41  ;;  %v244_v53 = vadd.f32 %v203_v43, %v147_v42  ;;  %v104_v54 = vsel %vm81_vm0, %v102_v44, %v103_v28  ;;  %v205_v55 = vrot.slane %v25_v35, 2 }
  0x1b   :  { %v640_v58 = vmul.f32 0.25, %v241_v46  ;;  %v146_v59 = vadd.f32 %v104_v54, %v21_v22  ;;  %v108_v60 = vrot.slane %v49_v48, 1  ;;  %v110_v61 = vrot.slane %v50_v50, 1 }
  0x1c   :  { %313 = vrot.lane.b32.xlu1 %v274_v52, %s521_s28  ;;  %v643_v62 = vmul.f32 0.25, %v244_v53  ;;  %v207_v63 = vrot.slane %v26_v36, 2  ;;  %v48_v1 = vmul.f32 2.0, %v24_v51  ;;  %v204_v2 = vrot.slane %v24_v51, 2 }
  0x1d   :  { %v273_v4 = vmul.f32 2.0, %v640_v58  ;;  %v243_v5 = vadd.f32 %v201_v47, %v146_v59  ;;  %v111_v6 = vsel %vm81_vm0, %v108_v60, %v110_v61  ;;  %v52_v7 = vmul.f32 2.0, %v28_v57 }
  0x1e   :  { %v276_v8 = vmul.f32 2.0, %v643_v62  ;;  %v149_v9 = vadd.f32 %v111_v6, %v25_v35  ;;  %v208_v10 = vsel %vm178_vm1, %v205_v55, %v207_v63  ;;  %v107_v11 = vrot.slane %v48_v1, 1 }
  0x1f   :  { %311 = vrot.lane.b32.xlu0 %v273_v4, %s521_s28  ;;  %v656_v13 = vmul.f32 0.25, %v243_v5  ;;  %v206_v15 = vsel %vm178_vm1, %v204_v2, %v205_v55  ;;  %v53_v16 = vmul.f32 2.0, %v29_v3  ;;  %v113_v17 = vrot.slane %v52_v7, 1 }
  0x20   :  { %317 = vrot.lane.b32.xlu1 %v276_v8, %s521_s28  ;;  %v246_v19 = vadd.f32 %v208_v10, %v149_v9  ;;  %v109_v20 = vsel %vm81_vm0, %v107_v11, %v108_v60  ;;  %v210_v21 = vrot.slane %v28_v57, 2  ;;  %v212_v22 = vrot.slane %v29_v3, 2 }
  0x21   :  { %v275_v24 = vmul.f32 2.0, %v656_v13  ;;  %v148_v25 = vadd.f32 %v109_v20, %v24_v51  ;;  %v115_v26 = vrot.slane %v53_v16, 1  ;;  %v51_v28 = vmul.f32 2.0, %v27_v12 }
  0x22   :  { %v668_v29 = vmul.f32 0.25, %v246_v19  ;;  %v213_v30 = vsel %vm178_vm1, %v210_v21, %v212_v22  ;;  %v209_v31 = vrot.slane %v27_v12, 2  ;;  %v55_v32 = vmul.f32 2.0, %v31_v18 }
  0x23   :  { %315 = vrot.lane.b32.xlu0 %v275_v24, %s521_s28  ;;  %v245_v33 = vadd.f32 %v206_v15, %v148_v25  ;;  %v116_v34 = vsel %vm81_vm0, %v113_v17, %v115_v26  ;;  %v112_v35 = vrot.slane %v51_v28, 1  ;;  %v56_v36 = vmul.f32 2.0, %v32_v23 }
  0x24   :  { %v278_v38 = vmul.f32 2.0, %v668_v29  ;;  %v151_v39 = vadd.f32 %v116_v34, %v28_v57  ;;  %v211_v40 = vsel %vm178_vm1, %v209_v31, %v210_v21  ;;  %v118_v42 = vrot.slane %v55_v32, 1 }
  0x25   :  { %v678_v43 = vmul.f32 0.25, %v245_v33  ;;  %v114_v44 = vsel %vm81_vm0, %v112_v35, %v113_v17  ;;  %v120_v46 = vrot.slane %v56_v36, 1  ;;  %v215_v47 = vrot.slane %v31_v18, 2 }
  0x26   :  { %321 = vrot.lane.b32.xlu1 %v278_v38, %s521_s28  ;;  %v248_v48 = vadd.f32 %v213_v30, %v151_v39  ;;  %v150_v50 = vadd.f32 %v114_v44, %v27_v12  ;;  %v217_v51 = vrot.slane %v32_v23, 2  ;;  %v54_v52 = vmul.f32 2.0, %v30_v37 }
  0x27   :  { %v277_v53 = vmul.f32 2.0, %v678_v43  ;;  %v121_v54 = vsel %vm81_vm0, %v118_v42, %v120_v46  ;;  %v214_v55 = vrot.slane %v30_v37, 2  ;;  %vm459_vm2 = vcmask 130048  }
  0x28   :  { %v684_v57 = vmul.f32 0.25, %v248_v48  ;;  %v247_v59 = vadd.f32 %v211_v40, %v150_v50  ;;  %v153_v60 = vadd.f32 %v121_v54, %v31_v18  ;;  %v218_v61 = vsel %vm178_vm1, %v215_v47, %v217_v51 }
  0x29   :  { %319 = vrot.lane.b32.xlu0 %v277_v53, %s521_s28  ;;  %v117_v63 = vrot.slane %v54_v52, 1  ;;  %v216_v5 = vsel %vm178_vm1, %v214_v55, %v215_v47 }
  0x2a   :  { %v280_v1 = vmul.f32 2.0, %v684_v57  ;;  %v689_v2 = vmul.f32 0.25, %v247_v59  ;;  %v250_v3 = vadd.f32 %v218_v61, %v153_v60 }
  0x2b   :  { %v119_v4 = vsel %vm81_vm0, %v117_v63, %v118_v42 }
  0x2c   :  { %325 = vrot.lane.b32.xlu1 %v280_v1, %s521_s28  ;;  %v279_v6 = vmul.f32 2.0, %v689_v2  ;;  %v695_v7 = vmul.f32 0.25, %v250_v3  ;;  %v152_v8 = vadd.f32 %v119_v4, %v30_v37 }
  0x2e   :  { %323 = vrot.lane.b32.xlu0 %v279_v6, %s521_s28  ;;  %v282_v9 = vmul.f32 2.0, %v695_v7  ;;  %v249_v10 = vadd.f32 %v216_v5, %v152_v8 }
  0x30   :  { %329 = vrot.lane.b32.xlu1 %v282_v9, %s521_s28  ;;  %v700_v11 = vmul.f32 0.25, %v249_v10 }
  0x32   :  { %v281_v12 = vmul.f32 2.0, %v700_v11 }
  0x34   :  { %327 = vrot.lane.b32.xlu0 %v281_v12, %s521_s28  ;;  %381 = vrot.lane.b32.xlu1 %v590_v0, %s522_s0  ;;  %s497_s28 = scalar_lea.vmem %s482_s27, 2048 }
  0x35   :  { %p498_p0 = scmp.ne.s32.totalorder %s482_s27, %s497_s28  ;;  %p503_p2 = scmp.lt.s32.totalorder %s497_s28, %s497_s28 }
  0x37   :  { %p504_p3 = por %p503_p2, %p502_p1 }
  0x38   :  { %379 = vrot.lane.b32.xlu0 %v573_v49, %s522_s0  ;;  %385 = vrot.lane.b32.xlu1 %v583_v56, %s522_s0 }
  0x39   :  { %p505_p4 = pnand %p504_p3, %p498_p0 }
  0x3c   :  { %383 = vrot.lane.b32.xlu0 %v571_v45, %s522_s0  ;;  %389 = vrot.lane.b32.xlu1 %v604_v14, %s522_s0 }
  0x40   :  { %387 = vrot.lane.b32.xlu0 %v615_v27, %s522_s0  ;;  %393 = vrot.lane.b32.xlu1 %v627_v41, %s522_s0 }
  0x44   :  { %391 = vrot.lane.b32.xlu0 %v640_v58, %s522_s0  ;;  %397 = vrot.lane.b32.xlu1 %v643_v62, %s522_s0 }
  0x48   :  { %395 = vrot.lane.b32.xlu0 %v656_v13, %s522_s0  ;;  %401 = vrot.lane.b32.xlu1 %v668_v29, %s522_s0 }
  0x4c   :  { %399 = vrot.lane.b32.xlu0 %v678_v43, %s522_s0  ;;  %405 = vrot.lane.b32.xlu1 %v684_v57, %s522_s0 }
  0x50   :  { %403 = vrot.lane.b32.xlu0 %v689_v2, %s522_s0  ;;  %409 = vrot.lane.b32.xlu1 %v695_v7, %s522_s0 }
  0x54   :  { %407 = vrot.lane.b32.xlu0 %v700_v11, %s522_s0 }
  0x81   :  { %v304_v15 = vpop.permute.xlu1 %303 }
  0x82   :  { %v300_v16 = vpop.permute.xlu0 %299  ;;  %v349_v46 = vadd.f32 %v304_v15, %v571_v45 }
  0x83   :  { %v347_v36 = vadd.f32 %v300_v16, %v573_v49 }
  0x85   :  { %v306_v17 = vpop.permute.xlu1 %305 }
  0x86   :  { %v302_v18 = vpop.permute.xlu0 %301  ;;  %v350_v37 = vadd.f32 %v306_v17, %v583_v56 }
  0x87   :  { %v348_v32 = vadd.f32 %v302_v18, %v590_v0 }
  0x89   :  { %v310_v19 = vpop.permute.xlu1 %309 }
  0x8a   :  { %v352_v0 = vadd.f32 %v310_v19, %v604_v14 }
  0x8b   :  { %v308_v20 = vpop.permute.xlu0 %307 }
  0x8c   :  { %v351_v52 = vadd.f32 %v308_v20, %v615_v27 }
  0x8e   :  { %v314_v21 = vpop.permute.xlu1 %313 }
  0x8f   :  { %v354_v53 = vadd.f32 %v314_v21, %v627_v41 }
  0x91   :  { %v312_v22 = vpop.permute.xlu0 %311 }
  0x92   :  { %v318_v23 = vpop.permute.xlu1 %317  ;;  %v353_v61 = vadd.f32 %v312_v22, %v640_v58 }
  0x93   :  { %v356_v63 = vadd.f32 %v318_v23, %v643_v62 }
  0x95   :  { %v316_v24 = vpop.permute.xlu0 %315 }
  0x96   :  { %v355_v6 = vadd.f32 %v316_v24, %v656_v13 }
  0x98   :  { %v322_v25 = vpop.permute.xlu1 %321 }
  0x99   :  { %v358_v8 = vadd.f32 %v322_v25, %v668_v29 }
  0x9b   :  { %v320_v26 = vpop.permute.xlu0 %319 }
  0x9c   :  { %v357_v16 = vadd.f32 %v320_v26, %v678_v43 }
  0x9e   :  { %v326_v28 = vpop.permute.xlu1 %325 }
  0x9f   :  { %v360_v17 = vadd.f32 %v326_v28, %v684_v57 }
  0xa0   :  { %v720_v30 = vpop.permute.xlu0 %323 }
  0xa1   :  { %v359_v22 = vadd.f32 %v720_v30, %v689_v2 }
  0xa2   :  { %v722_v31 = vpop.permute.xlu1 %329 }
  0xa3   :  { %v362_v23 = vadd.f32 %v722_v31, %v695_v7 }
  0xa6   :  { %v725_v33 = vpop.permute.xlu0 %327  ;;  %v382_v34 = vpop.permute.xlu1 %381 }
  0xa7   :  { %v428_v35 = vadd.f32 %v382_v34, %v348_v32  ;;  %v361_v32 = vadd.f32 %v725_v33, %v700_v11 }
  0xa9   :  { %v444_v38 = vmul.f32 0.25, %v428_v35 }
  0xaa   :  { %v380_v39 = vpop.permute.xlu0 %379  ;;  %v386_v40 = vpop.permute.xlu1 %385 }
  0xab   :  { %461 = vst.msk [vmem:[#allocation2 + $0x8] sm:$0xff] %vm459_vm2, %v444_v38  ;;  %v427_v42 = vadd.f32 %v380_v39, %v347_v36  ;;  %v430_v44 = vadd.f32 %v386_v40, %v350_v37 }
  0xad   :  { %v443_v47 = vmul.f32 0.25, %v427_v42  ;;  %v446_v48 = vmul.f32 0.25, %v430_v44 }
  0xae   :  { %v384_v50 = vpop.permute.xlu0 %383  ;;  %v390_v51 = vpop.permute.xlu1 %389 }
  0xaf   :  { %460 = vst.msk [vmem:[#allocation2] sm:$0xff] %vm459_vm2, %v443_v47  ;;  %463 = vst.msk [vmem:[#allocation2 + $0x18] sm:$0xff] %vm459_vm2, %v446_v48  ;;  %v429_v49 = vadd.f32 %v384_v50, %v349_v46  ;;  %v432_v56 = vadd.f32 %v390_v51, %v352_v0 }
  0xb1   :  { %v445_v54 = vmul.f32 0.25, %v429_v49  ;;  %v448_v55 = vmul.f32 0.25, %v432_v56 }
  0xb2   :  { %v388_v59 = vpop.permute.xlu0 %387  ;;  %v394_v45 = vpop.permute.xlu1 %393 }
  0xb3   :  { %462 = vst.msk [vmem:[#allocation2 + $0x10] sm:$0xff] %vm459_vm2, %v445_v54  ;;  %465 = vst.msk [vmem:[#allocation2 + $0x28] sm:$0xff] %vm459_vm2, %v448_v55  ;;  %v431_v14 = vadd.f32 %v388_v59, %v351_v52  ;;  %v434_v60 = vadd.f32 %v394_v45, %v354_v53 }
  0xb5   :  { %v447_v1 = vmul.f32 0.25, %v431_v14  ;;  %v450_v3 = vmul.f32 0.25, %v434_v60 }
  0xb6   :  { %v392_v4 = vpop.permute.xlu0 %391  ;;  %v398_v27 = vpop.permute.xlu1 %397 }
  0xb7   :  { %464 = vst.msk [vmem:[#allocation2 + $0x20] sm:$0xff] %vm459_vm2, %v447_v1  ;;  %467 = vst.msk [vmem:[#allocation2 + $0x38] sm:$0xff] %vm459_vm2, %v450_v3  ;;  %v433_v41 = vadd.f32 %v392_v4, %v353_v61  ;;  %v436_v5 = vadd.f32 %v398_v27, %v356_v63 }
  0xb9   :  { %v449_v9 = vmul.f32 0.25, %v433_v41  ;;  %v452_v10 = vmul.f32 0.25, %v436_v5 }
  0xba   :  { %v396_v12 = vpop.permute.xlu0 %395  ;;  %v402_v58 = vpop.permute.xlu1 %401 }
  0xbb   :  { %466 = vst.msk [vmem:[#allocation2 + $0x30] sm:$0xff] %vm459_vm2, %v449_v9  ;;  %469 = vst.msk [vmem:[#allocation2 + $0x48] sm:$0xff] %vm459_vm2, %v452_v10  ;;  %v435_v62 = vadd.f32 %v396_v12, %v355_v6  ;;  %v438_v15 = vadd.f32 %v402_v58, %v358_v8 }
  0xbd   :  { %v451_v18 = vmul.f32 0.25, %v435_v62  ;;  %v454_v19 = vmul.f32 0.25, %v438_v15 }
  0xbe   :  { %v400_v20 = vpop.permute.xlu0 %399  ;;  %v406_v13 = vpop.permute.xlu1 %405 }
  0xbf   :  { %468 = vst.msk [vmem:[#allocation2 + $0x40] sm:$0xff] %vm459_vm2, %v451_v18  ;;  %471 = vst.msk [vmem:[#allocation2 + $0x58] sm:$0xff] %vm459_vm2, %v454_v19  ;;  %v437_v29 = vadd.f32 %v400_v20, %v357_v16  ;;  %v440_v21 = vadd.f32 %v406_v13, %v360_v17 }
  0xc1   :  { %v453_v24 = vmul.f32 0.25, %v437_v29  ;;  %v456_v43 = vmul.f32 0.25, %v440_v21 }
  0xc2   :  { %v404_v25 = vpop.permute.xlu0 %403  ;;  %v410_v57 = vpop.permute.xlu1 %409 }
  0xc3   :  { %470 = vst.msk [vmem:[#allocation2 + $0x50] sm:$0xff] %vm459_vm2, %v453_v24  ;;  %473 = vst.msk [vmem:[#allocation2 + $0x68] sm:$0xff] %vm459_vm2, %v456_v43  ;;  %v439_v26 = vadd.f32 %v404_v25, %v359_v22  ;;  %v442_v28 = vadd.f32 %v410_v57, %v362_v23 }
  0xc5   :  { %v455_v34 = vmul.f32 0.25, %v439_v26  ;;  %v458_v35 = vmul.f32 0.25, %v442_v28 }
  0xc6   :  { %v408_v2 = vpop.permute.xlu0 %407 }
  0xc7   :  { %472 = vst.msk [vmem:[#allocation2 + $0x60] sm:$0xff] %vm459_vm2, %v455_v34  ;;  %475 = vst.msk [vmem:[#allocation2 + $0x78] sm:$0xff] %vm459_vm2, %v458_v35  ;;  %v441_v7 = vadd.f32 %v408_v2, %v361_v32 }
  0xc9   :  { %v457_v30 = vmul.f32 0.25, %v441_v7 }
  0xcb   :  { %474 = vst.msk [vmem:[#allocation2 + $0x70] sm:$0xff] %vm459_vm2, %v457_v30 }
  0xcc   :  { %508 = shalt.err (!%p505_p4)
}
  0xcd   :  { %s509_s2 = scalar_lea.hbm %s774_s1, 2048 }
  0xce   :  { %p510_p5 = scmp.ne.s32.totalorder %s774_s1, %s509_s2  ;;  %p513_p6 = scmp.lt.u32.totalorder %s509_s2, %s774_s1 }
  0xd0   :  { %p515_p7 = pnand %p513_p6, %p510_p5 }
  0xd2   :  { %518 = shalt.err (!%p515_p7)
}
  0xd3   :  { %s524_s7 = smov 128   ;;  %s525_s8 = smov 8  }
  0xd4   :  { %487 = dma.vmem_to_hbm [thread:$0]  %s482_s27, 2048, %s774_s1, [#allocation3], %s524_s7, %s524_s7, %s525_s8  }
  0xd5   :  { %519 = dma.done.wait [#allocation3], 2048  }
  0xd6   :  { %520 = vsyncadd [#allocation3], 4294965248 }
  0xd7   :  { %491 = vsyncpa [#allocation3], 1 }

</bundles_post_ra>
